<compile_context>
chip_gen: v5e
topology: v5e:2x2
jax: 0.10.0
libtpu: 0.0.40
codegen_flags: <defaults>
</compile_context>

<pallas_src>
import jax
import jax.numpy as jnp
from jax.experimental import pallas as pl
from jax.experimental.pallas import tpu as pltpu
from functools import partial

LANE = 128


def _round_up(n, m):
    return ((n + m - 1) // m) * m


def qnn_kernel(x_ref, w1_ref, b1_ref, w2_ref, b2_ref, w3_ref, b3_ref, o_ref,
               *, action_size):
    # Fused hot path: three MXU matmuls (bf16 in, f32 acc) + VPU relu / bias adds.
    x = x_ref[...].astype(w1_ref.dtype)
    h1 = jnp.dot(x, w1_ref[...], preferred_element_type=jnp.float32) + b1_ref[...]
    h1 = jnp.maximum(h1, 0.0).astype(w2_ref.dtype)
    h2 = jnp.dot(h1, w2_ref[...], preferred_element_type=jnp.float32) + b2_ref[...]
    h2 = jnp.maximum(h2, 0.0).astype(w3_ref.dtype)
    # 128-wide padded matmul for the MXU, but store only the real action columns
    # (A == full array dim of the output -> narrow HBM writeback).
    out = jnp.dot(h2, w3_ref[...], preferred_element_type=jnp.float32) + b3_ref[...]
    o_ref[...] = out[:, :action_size]


def prepare_params(w1, b1, w2, b2, w3, b3, use_bf16=True):
    """One-time parameter prep (hoisted out of the per-call forward).

    bf16 weights halve weight DMA bytes and use the native bf16 MXU rate while
    all accumulation stays f32; set use_bf16=False for bit-closer-to-PyTorch
    f32 math (Q-value argmax over near-tied values can flip under bf16).
    """
    wdt = jnp.bfloat16 if use_bf16 else jnp.float32
    H = w1.shape[1]
    A = w3.shape[1]
    A_pad = _round_up(A, LANE)
    w3p = jnp.zeros((H, A_pad), wdt).at[:, :A].set(w3.astype(wdt))
    b3p = jnp.zeros((1, A_pad), jnp.float32).at[:, :A].set(b3.astype(jnp.float32))
    return (w1.astype(wdt), b1.astype(jnp.float32),
            w2.astype(wdt), b2.astype(jnp.float32),
            w3p, b3p)


def _pick_tb(B, block_b):
    # Multiple of 16 (bf16 sublane packing of h1/h2; satisfies the (8,128) rule)
    # and capped at ~B/2 so v7x's two TensorCores both get work when possible.
    half = _round_up(max((B + 1) // 2, 16), 16)
    return min(_round_up(max(block_b, 16), 16), half)


@partial(jax.jit, static_argnames=("action_size", "block_b"))
def qnn_forward(x, params, action_size, block_b=2048):
    w1, b1, w2, b2, w3p, b3p = params
    B, S = x.shape
    H = w1.shape[1]
    A_pad = w3p.shape[1]
    A = action_size
    wbytes = jnp.dtype(w1.dtype).itemsize

    TB = _pick_tb(B, block_b)
    B_pad = _round_up(B, TB)
    if B_pad != B:
        x = jnp.pad(x, ((0, B_pad - B), (0, 0)))

    grid = (B_pad // TB,)

    # Per-step VMEM (TB=2048): x 2x64 KiB, h1/h2 ~1-2 MiB each, out 2x32 KiB,
    # weights ~0.1 MiB -> well under v7x's 32 MiB scoped default; intermediates
    # (h1/h2, TB x 512 B each) are what cap TB after the narrow-output fix.
    flops = 2 * B_pad * (S * H + H * H + H * A_pad)
    bytes_accessed = (B_pad * S * 4                            # x (f32)
                      + (S * H + H * H + H * A_pad) * wbytes   # weights
                      + (H + H + A_pad) * 4                    # f32 biases
                      + B_pad * A * 4)                         # narrow f32 output

    out = pl.pallas_call(
        partial(qnn_kernel, action_size=A),
        out_shape=jax.ShapeDtypeStruct((B_pad, A), jnp.float32),
        grid=grid,
        in_specs=[
            pl.BlockSpec((TB, S), lambda i: (i, 0)),        # x: tiled over batch
            pl.BlockSpec((S, H), lambda i: (0, 0)),         # w1: resident in VMEM
            pl.BlockSpec((1, H), lambda i: (0, 0)),         # b1: resident
            pl.BlockSpec((H, H), lambda i: (0, 0)),         # w2: resident
            pl.BlockSpec((1, H), lambda i: (0, 0)),         # b2: resident
            pl.BlockSpec((H, A_pad), lambda i: (0, 0)),     # w3 (padded): resident
            pl.BlockSpec((1, A_pad), lambda i: (0, 0)),     # b3 (padded): resident
        ],
        out_specs=pl.BlockSpec((TB, A), lambda i: (i, 0)),  # narrow (A-wide) store
        compiler_params=pltpu.CompilerParams(
            dimension_semantics=("parallel",)),             # v7x: shard batch tiles across 2 TCs
        cost_estimate=pl.CostEstimate(
            flops=flops, transcendentals=0, bytes_accessed=bytes_accessed),
    )(x, w1, b1, w2, b2, w3p, b3p)

    return out[:B]


def init_linear(key, fan_in, fan_out):
    # PyTorch nn.Linear default init: U(-1/sqrt(fan_in), 1/sqrt(fan_in)) for W and b.
    kw, kb = jax.random.split(key)
    bound = 1.0 / jnp.sqrt(jnp.float32(fan_in))
    w = jax.random.uniform(kw, (fan_in, fan_out), jnp.float32, -bound, bound)
    b = jax.random.uniform(kb, (1, fan_out), jnp.float32, -bound, bound)
    return w, b


def ref_forward(x, w1, b1, w2, b2, w3, b3):
    # Pure-JAX reference mirroring the kernel's bf16-weight / f32-accumulate math.
    h1 = jnp.maximum(
        jnp.dot(x.astype(jnp.bfloat16), w1.astype(jnp.bfloat16),
                preferred_element_type=jnp.float32) + b1, 0.0)
    h2 = jnp.maximum(
        jnp.dot(h1.astype(jnp.bfloat16), w2.astype(jnp.bfloat16),
                preferred_element_type=jnp.float32) + b2, 0.0)
    return jnp.dot(h2.astype(jnp.bfloat16), w3.astype(jnp.bfloat16),
                   preferred_element_type=jnp.float32) + b3


if __name__ == "__main__":
    state_size = 8
    action_size = 4
    batch = 64        # small demo batch; padded/tiled over the grid
    hidden = 128
    block_b = 16      # small tile so the demo exercises a multi-step grid (4 steps)

    key = jax.random.PRNGKey(0)
    k_x, k1, k2, k3 = jax.random.split(key, 4)

    x = jax.random.normal(k_x, (batch, state_size), jnp.float32)
    w1, b1 = init_linear(k1, state_size, hidden)
    w2, b2 = init_linear(k2, hidden, hidden)
    w3, b3 = init_linear(k3, hidden, action_size)

    # One-time parameter prep (bf16 cast + lane-dense padding of the last layer).
    params = prepare_params(w1, b1, w2, b2, w3, b3, use_bf16=True)

    out = qnn_forward(x, params, action_size=action_size, block_b=block_b)
    out = jax.block_until_ready(out)

    ref = ref_forward(x, w1, b1, w2, b2, w3, b3)

    assert out.shape == (batch, action_size)
    assert jnp.allclose(out, ref, atol=2e-3, rtol=2e-3), float(jnp.abs(out - ref).max())
    # Loose sanity check vs the original full-f32 PyTorch-equivalent math.
    ref_f32 = jnp.maximum(jnp.maximum(x @ w1 + b1, 0.0) @ w2 + b2, 0.0) @ w3 + b3
    assert jnp.allclose(out, ref_f32, atol=5e-2, rtol=5e-2)

    # Also exercise the default large-batch tile path once (single/dual-step grid).
    out2 = jax.block_until_ready(qnn_forward(x, params, action_size=action_size))
    assert jnp.allclose(out2, ref, atol=2e-3, rtol=2e-3)

    print("KERNEL_OK")
</pallas_src>

<mosaic_0001>
module attributes {stable_mosaic.version = 11 : i64} {
  func.func @qnn_kernel(%arg0: i32, %arg1: memref<16x8xf32, #tpu.memory_space<vmem>>, %arg2: memref<8x128xbf16, #tpu.memory_space<vmem>>, %arg3: memref<1x128xf32, #tpu.memory_space<vmem>>, %arg4: memref<128x128xbf16, #tpu.memory_space<vmem>>, %arg5: memref<1x128xf32, #tpu.memory_space<vmem>>, %arg6: memref<128x128xbf16, #tpu.memory_space<vmem>>, %arg7: memref<1x128xf32, #tpu.memory_space<vmem>>, %arg8: memref<16x4xf32, #tpu.memory_space<vmem>>) attributes {dimension_semantics = [#tpu.dimension_semantics<parallel>], iteration_bounds = array<i64: 4>, scalar_prefetch = 0 : i64, scratch_operands = 0 : i64, tpu.core_type = #tpu.core_type<tc>, window_params = [{transform_indices = @transform_0, window_bounds = array<i64: 16, 8>}, {pipeline_mode = #tpu.pipeline_mode<synchronous>, transform_indices = @transform_1, window_bounds = array<i64: 8, 128>}, {pipeline_mode = #tpu.pipeline_mode<synchronous>, transform_indices = @transform_2, window_bounds = array<i64: 1, 128>}, {pipeline_mode = #tpu.pipeline_mode<synchronous>, transform_indices = @transform_3, window_bounds = array<i64: 128, 128>}, {pipeline_mode = #tpu.pipeline_mode<synchronous>, transform_indices = @transform_4, window_bounds = array<i64: 1, 128>}, {pipeline_mode = #tpu.pipeline_mode<synchronous>, transform_indices = @transform_5, window_bounds = array<i64: 128, 128>}, {pipeline_mode = #tpu.pipeline_mode<synchronous>, transform_indices = @transform_6, window_bounds = array<i64: 1, 128>}, {transform_indices = @transform_7, window_bounds = array<i64: 16, 4>}]} {
    %c0 = arith.constant 0 : index
    %c0_0 = arith.constant 0 : index
    %0 = vector.load %arg1[%c0, %c0_0] : memref<16x8xf32, #tpu.memory_space<vmem>>, vector<16x8xf32>
    %1 = arith.truncf %0 : vector<16x8xf32> to vector<16x8xbf16>
    %c0_1 = arith.constant 0 : index
    %c0_2 = arith.constant 0 : index
    %2 = vector.load %arg2[%c0_1, %c0_2] : memref<8x128xbf16, #tpu.memory_space<vmem>>, vector<8x128xbf16>
    %cst = arith.constant dense<0.000000e+00> : vector<16x128xf32>
    %3 = tpu.matmul %1, %2, %cst {dimension_numbers = #tpu.dot_dimension_numbers<[1], [0], [0], [1], [0, 0, 1, 1], [], []>} : vector<16x8xbf16>, vector<8x128xbf16>, vector<16x128xf32> -> vector<16x128xf32>
    %c0_3 = arith.constant 0 : index
    %c0_4 = arith.constant 0 : index
    %4 = vector.load %arg3[%c0_3, %c0_4] : memref<1x128xf32, #tpu.memory_space<vmem>>, vector<1x128xf32>
    %5 = vector.broadcast %4 : vector<1x128xf32> to vector<16x128xf32>
    %6 = arith.addf %3, %5 : vector<16x128xf32>
    %cst_5 = arith.constant 0.000000e+00 : f32
    %7 = vector.broadcast %cst_5 : f32 to vector<16x128xf32>
    %8 = arith.maximumf %6, %7 : vector<16x128xf32>
    %9 = arith.truncf %8 : vector<16x128xf32> to vector<16x128xbf16>
    %c0_6 = arith.constant 0 : index
    %c0_7 = arith.constant 0 : index
    %10 = vector.load %arg4[%c0_6, %c0_7] : memref<128x128xbf16, #tpu.memory_space<vmem>>, vector<128x128xbf16>
    %cst_8 = arith.constant dense<0.000000e+00> : vector<16x128xf32>
    %11 = tpu.matmul %9, %10, %cst_8 {dimension_numbers = #tpu.dot_dimension_numbers<[1], [0], [0], [1], [0, 0, 1, 1], [], []>} : vector<16x128xbf16>, vector<128x128xbf16>, vector<16x128xf32> -> vector<16x128xf32>
    %c0_9 = arith.constant 0 : index
    %c0_10 = arith.constant 0 : index
    %12 = vector.load %arg5[%c0_9, %c0_10] : memref<1x128xf32, #tpu.memory_space<vmem>>, vector<1x128xf32>
    %13 = vector.broadcast %12 : vector<1x128xf32> to vector<16x128xf32>
    %14 = arith.addf %11, %13 : vector<16x128xf32>
    %cst_11 = arith.constant 0.000000e+00 : f32
    %15 = vector.broadcast %cst_11 : f32 to vector<16x128xf32>
    %16 = arith.maximumf %14, %15 : vector<16x128xf32>
    %17 = arith.truncf %16 : vector<16x128xf32> to vector<16x128xbf16>
    %c0_12 = arith.constant 0 : index
    %c0_13 = arith.constant 0 : index
    %18 = vector.load %arg6[%c0_12, %c0_13] : memref<128x128xbf16, #tpu.memory_space<vmem>>, vector<128x128xbf16>
    %cst_14 = arith.constant dense<0.000000e+00> : vector<16x128xf32>
    %19 = tpu.matmul %17, %18, %cst_14 {dimension_numbers = #tpu.dot_dimension_numbers<[1], [0], [0], [1], [0, 0, 1, 1], [], []>} : vector<16x128xbf16>, vector<128x128xbf16>, vector<16x128xf32> -> vector<16x128xf32>
    %c0_15 = arith.constant 0 : index
    %c0_16 = arith.constant 0 : index
    %20 = vector.load %arg7[%c0_15, %c0_16] : memref<1x128xf32, #tpu.memory_space<vmem>>, vector<1x128xf32>
    %21 = vector.broadcast %20 : vector<1x128xf32> to vector<16x128xf32>
    %22 = arith.addf %19, %21 : vector<16x128xf32>
    %23 = vector.extract_strided_slice %22 {offsets = [0, 0], sizes = [16, 4], strides = [1, 1]} : vector<16x128xf32> to vector<16x4xf32>
    %c0_17 = arith.constant 0 : index
    %c0_18 = arith.constant 0 : index
    %24 = vector.load %arg8[%c0_17, %c0_18] : memref<16x4xf32, #tpu.memory_space<vmem>>, vector<16x4xf32>
    tpu.vector_store %arg8[%c0_17, %c0_18], %23 {strides = array<i32>} : memref<16x4xf32, #tpu.memory_space<vmem>>, vector<16x4xf32>,
    return
  }
  func.func @transform_0(%arg0: i32) -> (i32, i32) {
    %c0_i32 = arith.constant 0 : i32
    %c0_i32_0 = arith.constant 0 : i32
    return %arg0, %c0_i32 : i32, i32
  }
  func.func @transform_1(%arg0: i32) -> (i32, i32) {
    %c0_i32 = arith.constant 0 : i32
    %c0_i32_0 = arith.constant 0 : i32
    %c0_i32_1 = arith.constant 0 : i32
    return %c0_i32, %c0_i32_0 : i32, i32
  }
  func.func @transform_2(%arg0: i32) -> (i32, i32) {
    %c0_i32 = arith.constant 0 : i32
    %c0_i32_0 = arith.constant 0 : i32
    %c0_i32_1 = arith.constant 0 : i32
    return %c0_i32, %c0_i32_0 : i32, i32
  }
  func.func @transform_3(%arg0: i32) -> (i32, i32) {
    %c0_i32 = arith.constant 0 : i32
    %c0_i32_0 = arith.constant 0 : i32
    %c0_i32_1 = arith.constant 0 : i32
    return %c0_i32, %c0_i32_0 : i32, i32
  }
  func.func @transform_4(%arg0: i32) -> (i32, i32) {
    %c0_i32 = arith.constant 0 : i32
    %c0_i32_0 = arith.constant 0 : i32
    %c0_i32_1 = arith.constant 0 : i32
    return %c0_i32, %c0_i32_0 : i32, i32
  }
  func.func @transform_5(%arg0: i32) -> (i32, i32) {
    %c0_i32 = arith.constant 0 : i32
    %c0_i32_0 = arith.constant 0 : i32
    %c0_i32_1 = arith.constant 0 : i32
    return %c0_i32, %c0_i32_0 : i32, i32
  }
  func.func @transform_6(%arg0: i32) -> (i32, i32) {
    %c0_i32 = arith.constant 0 : i32
    %c0_i32_0 = arith.constant 0 : i32
    %c0_i32_1 = arith.constant 0 : i32
    return %c0_i32, %c0_i32_0 : i32, i32
  }
  func.func @transform_7(%arg0: i32) -> (i32, i32) {
    %c0_i32 = arith.constant 0 : i32
    %c0_i32_0 = arith.constant 0 : i32
    return %arg0, %c0_i32 : i32, i32
  }
}

</mosaic_0001>

<bundles_post_ra>
// kernel: qnn_forward.1
= control target key start
LH: loop header
LB: loop body
LE: loop exit
PB: predicated region body
PF: predicated region fallthrough
CT: control target
= control target key end

     0   :  { %12 = vsyncpa [#allocation3], 0  ;;  %s774_s24 = smov 0   ;;  %s837_s0 = inlined_call_operand.vmem [shape: f32[64,8], index: 0, kind: input, shape index: {}]   ;;  %s838_s1 = inlined_call_operand.vmem [shape: bf16[8,128], index: 1, kind: input, shape index: {}]   ;;  %s839_s2 = inlined_call_operand.vmem [shape: f32[1,128], index: 2, kind: input, shape index: {}]   ;;  %s840_s3 = inlined_call_operand.vmem [shape: bf16[128,128], index: 3, kind: input, shape index: {}]   ;;  %s841_s4 = inlined_call_operand.vmem [shape: f32[1,128], index: 4, kind: input, shape index: {}]   ;;  %s842_s5 = inlined_call_operand.hbm [shape: bf16[128,128], index: 5, kind: input, shape index: {}]   ;;  %s843_s6 = inlined_call_operand.vmem [shape: f32[1,128], index: 6, kind: input, shape index: {}]   ;;  %s844_s7 = inlined_call_operand.vmem [shape: f32[64,4], index: 7, kind: output, shape index: {}]  }
   0x1 LB: > { %s224_s27 = sshll.u32 %s842_s5, 4  ;;  %s571_s28 = sadd.s32 4294967295, %s729_s24   ;;  %s729_s24 = sphi %s774_s24, %s18_s24   ;;  %s225_s27 = int_to_ptr.hbm [resolvable:$true] %s224_s27 }
   0x2   : > { %p573_p0 = scmp.ge.s32.totalorder %s729_s24, 1  ;;  %p201_p1 = scmp.lt.s32.totalorder %s729_s24, 5 }
   0x3   : > { %p673_p2 = scmp.eq.s32.totalorder %s571_s28, 0  ;;  %s731_s29 = smov [#allocation2]  }
   0x4   : > { %p202_p3 = pnand %p573_p0, %p201_p1  ;;  %s226_s30 = sshll.u32 %s731_s29, 4  ;;  %s227_s30 = int_to_ptr.vmem [resolvable:$true] %s226_s30 }
   0x5   : > { %s732_s8 = smov 64   ;;  %s733_s9 = smov 4  }
   0x6   : > { %p669_p4 = pneg %p202_p3  ;;  %254 = sbr.rel (%p202_p3) target bundleno = 444 (0x1bc), region = 48 }
   0x8   : > { %p670_p5 = pnand %p673_p2, %p669_p4 }
   0xa   : > { %672 = dma.hbm_to_vmem [thread:$0]  (!%p670_p5), %s225_s27, 1024, %s227_s30, [#allocation3], %s732_s8, %s732_s8, %s733_s9  }
   0xb   : > { %724 = dma.done.wait (%p673_p2), [#allocation3], 1024  }
   0xc   : > { %726 = vsyncadd (%p673_p2), [#allocation3], 4294966272  ;;  %s578_s10 = sshll.u32 %s571_s28, 1  ;;  %vm312_vm0 = vcmask 1043456   ;;  %v303_v0 = vld [vmem:[%s838_s1] sm:$0xf] }
   0xd   : > { %p288_p6 = scmp.lt.s32.totalorder %s578_s10, 7  ;;  %v314_v3 = vsel %vm312_vm0, %v303_v0, 0  ;;  %v656_v5 = vld [vmem:[%s840_s3 + $0x38] sm:$0xff]  ;;  %vm308_vm1 = vcmask 64512   ;;  %v655_v6 = vld [vmem:[%s840_s3 + $0x30] sm:$0xff]  ;;  %v654_v7 = vld [vmem:[%s840_s3 + $0x28] sm:$0xff] }
   0xe   : > { %323 = vmatpush.bf16.msra.mxu0 %v314_v3  ;;  %401 = vmatpush.bf16.msra.mxu1 %v656_v5  ;;  %v653_v8 = vld [vmem:[%s840_s3 + $0x20] sm:$0xff]  ;;  %v652_v9 = vld [vmem:[%s840_s3 + $0x18] sm:$0xff]  ;;  %v651_v10 = vld [vmem:[%s840_s3 + $0x10] sm:$0xff]  ;;  %vm500_vm2 = vcmask 31744  }
   0xf   : > { %s846_s10 = smov (!%p288_p6, %s578_s10), 7  ;;  %v650_v11 = vld [vmem:[%s840_s3 + $0x8] sm:$0xff]  ;;  %v649_v12 = vld [vmem:[%s840_s3] sm:$0xff]  ;;  %v664_v13 = vld [vmem:[#allocation2 + $0x38] sm:$0xff] }
  0x10   : > { %s579_s11 = sshll.u32 %s846_s10, 3  ;;  %486 = vmatpush.bf16.msra.mxu2 %v664_v13  ;;  %v663_v14 = vld [vmem:[#allocation2 + $0x30] sm:$0xff]  ;;  %v662_v15 = vld [vmem:[#allocation2 + $0x28] sm:$0xff]  ;;  %v661_v16 = vld [vmem:[#allocation2 + $0x20] sm:$0xff] }
  0x11   : > { %s291_s14 = scalar_lea.vmem %s837_s0, %s579_s11  ;;  %v686_v18 = vld [vmem:[%s839_s2] ss:$0 sm:$0xff]  ;;  %v660_v25 = vld [vmem:[#allocation2 + $0x18] sm:$0xff]  ;;  %v659_v26 = vld [vmem:[#allocation2 + $0x10] sm:$0xff]  ;;  %s297_s21 = scalar_lea.vmem %s844_s7, %s579_s11 }
  0x12   : > { %v300_v1 = vld [vmem:[%s291_s14] sm:$0xff]  ;;  %v301_v2 = vld [vmem:[%s291_s14 + $0x8] sm:$0xff]  ;;  %402 = vmatpush.bf16.msra.mxu1 %v655_v6 }
  0x13   : > { %v302_v4 = vpack.c.bf16 %v301_v2, %v300_v1  ;;  %v658_v27 = vld [vmem:[#allocation2 + $0x8] sm:$0xff]  ;;  %v657_v28 = vld [vmem:[#allocation2] sm:$0xff] }
  0x14   : > { %487 = vmatpush.bf16.msra.mxu2 %v663_v14  ;;  %v687_v30 = vld [vmem:[%s841_s4] ss:$0 sm:$0xff] }
  0x15   : > { %582 = vmatmul.msk.bf16.vlgmr.msra.gmra.mxu0 %vm308_vm1, %v302_v4  ;;  %v688_v37 = vld [vmem:[%s843_s6] ss:$0 sm:$0xff] }
  0x16   : > { %403 = vmatpush.bf16.msra.mxu1 %v654_v7 }
  0x18   : > { %488 = vmatpush.bf16.msra.mxu2 %v662_v15 }
  0x1a   : > { %404 = vmatpush.bf16.msra.mxu1 %v653_v8 }
  0x1c   : > { %489 = vmatpush.bf16.msra.mxu2 %v661_v16 }
  0x1e   : > { %405 = vmatpush.bf16.msra.mxu1 %v652_v9 }
  0x20   : > { %490 = vmatpush.bf16.msra.mxu2 %v660_v25 }
  0x22   : > { %406 = vmatpush.bf16.msra.mxu1 %v651_v10 }
  0x24   : > { %491 = vmatpush.bf16.msra.mxu2 %v659_v26 }
  0x26   : > { %407 = vmatpush.bf16.msra.mxu1 %v650_v11 }
  0x28   : > { %492 = vmatpush.bf16.msra.mxu2 %v658_v27 }
  0x2a   : > { %408 = vmatpush.bf16.msra.mxu1 %v649_v12 }
  0x2c   : > { %493 = vmatpush.bf16.msra.mxu2 %v657_v28 }
  0x92   : > { %v325_v17 = vpop.f32.mrf.mxu0 }
  0x93   : > { %v326_v19 = vadd.f32 %v686_v18, %v325_v17 }
  0x95   : > { %v330_v22 = vmax.f32 %v326_v19, 0.0 }
  0x9a   : > { %v327_v20 = vpop.f32.mrf.mxu0 }
  0x9b   : > { %v328_v21 = vadd.f32 %v686_v18, %v327_v20 }
  0x9d   : > { %v331_v23 = vmax.f32 %v328_v21, 0.0 }
  0x9f   : > { %v332_v24 = vpack.c.bf16 %v331_v23, %v330_v22 }
  0xa1   : > { %409 = vmatmul.bf16.vlgmr.msra.gmra.mxu1 %v332_v24 }
 0x11e   : > { %v410_v29 = vpop.f32.mrf.mxu1 }
 0x11f   : > { %v411_v31 = vadd.f32 %v687_v30, %v410_v29 }
 0x121   : > { %v415_v34 = vmax.f32 %v411_v31, 0.0 }
 0x126   : > { %v412_v32 = vpop.f32.mrf.mxu1 }
 0x127   : > { %v413_v33 = vadd.f32 %v687_v30, %v412_v32 }
 0x129   : > { %v416_v35 = vmax.f32 %v413_v33, 0.0 }
 0x12b   : > { %v417_v36 = vpack.c.bf16 %v416_v35, %v415_v34 }
 0x12d   : > { %494 = vmatmul.bf16.vlgmr.msra.gmra.mxu2 %v417_v36 }
 0x1b0   : > { %v495_v38 = vpop.f32.mrf.mxu2 }
 0x1b1   : > { %v496_v39 = vadd.f32 %v688_v37, %v495_v38 }
 0x1b3   : > { %501 = vst.msk [vmem:[%s297_s21] sm:$0xff] %vm500_vm2, %v496_v39 }
 0x1b8   : > { %v497_v40 = vpop.f32.mrf.mxu2 }
 0x1b9   : > { %v498_v41 = vadd.f32 %v688_v37, %v497_v40 }
 0x1bb   : > { %502 = vst.msk [vmem:[%s297_s21 + $0x8] sm:$0xff] %vm500_vm2, %v498_v41 }
 0x1bc PF: > { %s18_s24 = sadd.s32 1, %s729_s24  }
 0x1bd   : > { %p15_p7 = scmp.ge.s32.totalorder %s18_s24, 6  }
 0x1bf   :  { %17 = sbr.rel (!%p15_p7) target bundleno = 1 (0x1), region = 83 }
 0x1c4   :  { %525 = vsyncpa [#allocation3], 1 }
 0x1c5   :  { %527 = vsyncpa [#allocation3 + $0x1], 1 }

</bundles_post_ra>
